<compile_context>
chip_gen: v6e
topology: v6e:2x2x1
jax: 0.10.0
libtpu: 0.0.40
codegen_flags: <defaults>
</compile_context>

<pallas_src>
import jax
import jax.numpy as jnp
from jax.experimental import pallas as pl
from jax.experimental.pallas import tpu as pltpu

LANE = 128


def _round_up(n, m):
    return ((n + m - 1) // m) * m


def _mlp_kernel(x_ref,
                w1_ref, b1_ref,
                w2_ref, b2_ref,
                w3_ref, b3_ref,
                w4_ref, b4_ref,
                o_ref):
    """One TILE_B x F slab of the batch: full 4-layer MLP on the MXU.
    Weights are bf16 (lane-padded); accumulation and elementwise math in f32."""
    h = x_ref[...].astype(jnp.bfloat16)

    h = jnp.dot(h, w1_ref[...], preferred_element_type=jnp.float32) + b1_ref[...]
    h = jnp.maximum(h, 0.0)

    h = jnp.dot(h.astype(jnp.bfloat16), w2_ref[...],
                preferred_element_type=jnp.float32) + b2_ref[...]
    h = jnp.maximum(h, 0.0)

    h = jnp.dot(h.astype(jnp.bfloat16), w3_ref[...],
                preferred_element_type=jnp.float32) + b3_ref[...]
    h = jnp.maximum(h, 0.0)

    h = jnp.dot(h.astype(jnp.bfloat16), w4_ref[...],
                preferred_element_type=jnp.float32) + b4_ref[...]

    o_ref[...] = h.astype(o_ref.dtype)


def init_params(key, inputsize, outputsize):
    """PyTorch nn.Linear default init: U(-1/sqrt(fan_in), 1/sqrt(fan_in)).
    Weights stored pre-transposed as (in, out) so each layer is x @ W + b."""
    sizes = [(inputsize, 64), (64, 32), (32, 16), (16, outputsize)]
    params = []
    for fan_in, fan_out in sizes:
        key, kw, kb = jax.random.split(key, 3)
        bound = 1.0 / (fan_in ** 0.5)
        w_t = jax.random.uniform(kw, (fan_in, fan_out), jnp.float32, -bound, bound)
        b = jax.random.uniform(kb, (fan_out,), jnp.float32, -bound, bound)
        params.append((w_t, b))
    return params


def prepare_params(params):
    """Zero-pad each layer's output width (and the next layer's input width) to a
    multiple of 128 lanes; cast weights to bf16, keep biases f32 as (1, N) rows."""
    prepared = []
    for li, (w, b) in enumerate(params):
        k_in, n_out = w.shape
        k_pad = k_in if li == 0 else _round_up(max(k_in, LANE), LANE)
        n_pad = _round_up(max(n_out, LANE), LANE)
        wp = jnp.zeros((k_pad, n_pad), jnp.float32).at[:k_in, :n_out].set(w)
        bp = jnp.zeros((1, n_pad), jnp.float32).at[0, :n_out].set(b)
        prepared.append((wp.astype(jnp.bfloat16), bp))
    return prepared


def dnn_utilization_forward(x, prepared_params, outputsize, *, tile_b=256):
    """x: (B, inputsize) float32. prepared_params: output of prepare_params."""
    (w1, b1), (w2, b2), (w3, b3), (w4, b4) = prepared_params
    B, F = x.shape
    n_out_pad = w4.shape[1]

    # Batch tiling: multiple of 8 sublanes; pad the batch so the grid divides evenly.
    tile_b = min(tile_b, _round_up(B, 8))
    Bp = _round_up(B, tile_b)
    if Bp != B:
        x = jnp.pad(x, ((0, Bp - B), (0, 0)))
    grid = (Bp // tile_b,)

    def resident(a):
        zeros = (0,) * a.ndim
        return pl.BlockSpec(a.shape, lambda i: zeros)  # same block every step -> stays in VMEM

    out = pl.pallas_call(
        _mlp_kernel,
        out_shape=jax.ShapeDtypeStruct((Bp, n_out_pad), jnp.float32),
        grid=grid,
        in_specs=[pl.BlockSpec((tile_b, F), lambda i: (i, 0)),
                  resident(w1), resident(b1),
                  resident(w2), resident(b2),
                  resident(w3), resident(b3),
                  resident(w4), resident(b4)],
        out_specs=pl.BlockSpec((tile_b, n_out_pad), lambda i: (i, 0)),
        compiler_params=pltpu.CompilerParams(
            dimension_semantics=("parallel",)),
    )(x, w1, b1, w2, b2, w3, b3, w4, b4)

    return out[:B, :outputsize]


def dnn_reference_f32(x, params):
    """Pure-f32 JAX reference (matches the PyTorch module's math)."""
    h = x
    for i, (w, b) in enumerate(params):
        h = h @ w + b
        if i < len(params) - 1:
            h = jnp.maximum(h, 0.0)
    return h


def dnn_reference_bf16(x, params):
    """Reference with the same mixed precision as the kernel (bf16 dot inputs,
    f32 accumulation / bias / ReLU) for a tight correctness check."""
    h = x
    for i, (w, b) in enumerate(params):
        h = jnp.dot(h.astype(jnp.bfloat16), w.astype(jnp.bfloat16),
                    preferred_element_type=jnp.float32) + b
        if i < len(params) - 1:
            h = jnp.maximum(h, 0.0)
    return h


if __name__ == "__main__":
    key = jax.random.PRNGKey(0)
    inputsize, outputsize = 32, 8
    batch = 300  # not a multiple of tile_b -> exercises batch padding + 2 grid steps

    kx, kp = jax.random.split(key)
    x = jax.random.normal(kx, (batch, inputsize), jnp.float32)
    params = init_params(kp, inputsize, outputsize)
    prepared = prepare_params(params)

    out = dnn_utilization_forward(x, prepared, outputsize, tile_b=256)
    out = jax.block_until_ready(out)

    assert out.shape == (batch, outputsize)

    ref_bf16 = dnn_reference_bf16(x, params)
    assert jnp.allclose(out, ref_bf16, atol=1e-2, rtol=1e-2), \
        "mismatch vs bf16-matched reference"

    ref_f32 = dnn_reference_f32(x, params)
    assert jnp.allclose(out, ref_f32, atol=1e-1, rtol=1e-1), \
        "mismatch vs f32 reference"

    print("KERNEL_OK")
</pallas_src>

<mosaic_0001>
module attributes {stable_mosaic.version = 11 : i64} {
  func.func @_mlp_kernel(%arg0: i32, %arg1: memref<256x32xf32, #tpu.memory_space<vmem>>, %arg2: memref<32x128xbf16, #tpu.memory_space<vmem>>, %arg3: memref<1x128xf32, #tpu.memory_space<vmem>>, %arg4: memref<128x128xbf16, #tpu.memory_space<vmem>>, %arg5: memref<1x128xf32, #tpu.memory_space<vmem>>, %arg6: memref<128x128xbf16, #tpu.memory_space<vmem>>, %arg7: memref<1x128xf32, #tpu.memory_space<vmem>>, %arg8: memref<128x128xbf16, #tpu.memory_space<vmem>>, %arg9: memref<1x128xf32, #tpu.memory_space<vmem>>, %arg10: memref<256x128xf32, #tpu.memory_space<vmem>>) attributes {dimension_semantics = [#tpu.dimension_semantics<parallel>], iteration_bounds = array<i64: 2>, scalar_prefetch = 0 : i64, scratch_operands = 0 : i64, tpu.core_type = #tpu.core_type<tc>, window_params = [{transform_indices = @transform_0, window_bounds = array<i64: 256, 32>}, {pipeline_mode = #tpu.pipeline_mode<synchronous>, transform_indices = @transform_1, window_bounds = array<i64: 32, 128>}, {pipeline_mode = #tpu.pipeline_mode<synchronous>, transform_indices = @transform_2, window_bounds = array<i64: 1, 128>}, {pipeline_mode = #tpu.pipeline_mode<synchronous>, transform_indices = @transform_3, window_bounds = array<i64: 128, 128>}, {pipeline_mode = #tpu.pipeline_mode<synchronous>, transform_indices = @transform_4, window_bounds = array<i64: 1, 128>}, {pipeline_mode = #tpu.pipeline_mode<synchronous>, transform_indices = @transform_5, window_bounds = array<i64: 128, 128>}, {pipeline_mode = #tpu.pipeline_mode<synchronous>, transform_indices = @transform_6, window_bounds = array<i64: 1, 128>}, {pipeline_mode = #tpu.pipeline_mode<synchronous>, transform_indices = @transform_7, window_bounds = array<i64: 128, 128>}, {pipeline_mode = #tpu.pipeline_mode<synchronous>, transform_indices = @transform_8, window_bounds = array<i64: 1, 128>}, {transform_indices = @transform_9, window_bounds = array<i64: 256, 128>}]} {
    %c0 = arith.constant 0 : index
    %c0_0 = arith.constant 0 : index
    %0 = vector.load %arg1[%c0, %c0_0] : memref<256x32xf32, #tpu.memory_space<vmem>>, vector<256x32xf32>
    %1 = arith.truncf %0 : vector<256x32xf32> to vector<256x32xbf16>
    %c0_1 = arith.constant 0 : index
    %c0_2 = arith.constant 0 : index
    %2 = vector.load %arg2[%c0_1, %c0_2] : memref<32x128xbf16, #tpu.memory_space<vmem>>, vector<32x128xbf16>
    %cst = arith.constant dense<0.000000e+00> : vector<256x128xf32>
    %3 = tpu.matmul %1, %2, %cst {dimension_numbers = #tpu.dot_dimension_numbers<[1], [0], [0], [1], [0, 0, 1, 1], [], []>} : vector<256x32xbf16>, vector<32x128xbf16>, vector<256x128xf32> -> vector<256x128xf32>
    %c0_3 = arith.constant 0 : index
    %c0_4 = arith.constant 0 : index
    %4 = vector.load %arg3[%c0_3, %c0_4] : memref<1x128xf32, #tpu.memory_space<vmem>>, vector<1x128xf32>
    %5 = vector.broadcast %4 : vector<1x128xf32> to vector<256x128xf32>
    %6 = arith.addf %3, %5 : vector<256x128xf32>
    %cst_5 = arith.constant 0.000000e+00 : f32
    %7 = vector.broadcast %cst_5 : f32 to vector<256x128xf32>
    %8 = arith.maximumf %6, %7 : vector<256x128xf32>
    %9 = arith.truncf %8 : vector<256x128xf32> to vector<256x128xbf16>
    %c0_6 = arith.constant 0 : index
    %c0_7 = arith.constant 0 : index
    %10 = vector.load %arg4[%c0_6, %c0_7] : memref<128x128xbf16, #tpu.memory_space<vmem>>, vector<128x128xbf16>
    %cst_8 = arith.constant dense<0.000000e+00> : vector<256x128xf32>
    %11 = tpu.matmul %9, %10, %cst_8 {dimension_numbers = #tpu.dot_dimension_numbers<[1], [0], [0], [1], [0, 0, 1, 1], [], []>} : vector<256x128xbf16>, vector<128x128xbf16>, vector<256x128xf32> -> vector<256x128xf32>
    %c0_9 = arith.constant 0 : index
    %c0_10 = arith.constant 0 : index
    %12 = vector.load %arg5[%c0_9, %c0_10] : memref<1x128xf32, #tpu.memory_space<vmem>>, vector<1x128xf32>
    %13 = vector.broadcast %12 : vector<1x128xf32> to vector<256x128xf32>
    %14 = arith.addf %11, %13 : vector<256x128xf32>
    %cst_11 = arith.constant 0.000000e+00 : f32
    %15 = vector.broadcast %cst_11 : f32 to vector<256x128xf32>
    %16 = arith.maximumf %14, %15 : vector<256x128xf32>
    %17 = arith.truncf %16 : vector<256x128xf32> to vector<256x128xbf16>
    %c0_12 = arith.constant 0 : index
    %c0_13 = arith.constant 0 : index
    %18 = vector.load %arg6[%c0_12, %c0_13] : memref<128x128xbf16, #tpu.memory_space<vmem>>, vector<128x128xbf16>
    %cst_14 = arith.constant dense<0.000000e+00> : vector<256x128xf32>
    %19 = tpu.matmul %17, %18, %cst_14 {dimension_numbers = #tpu.dot_dimension_numbers<[1], [0], [0], [1], [0, 0, 1, 1], [], []>} : vector<256x128xbf16>, vector<128x128xbf16>, vector<256x128xf32> -> vector<256x128xf32>
    %c0_15 = arith.constant 0 : index
    %c0_16 = arith.constant 0 : index
    %20 = vector.load %arg7[%c0_15, %c0_16] : memref<1x128xf32, #tpu.memory_space<vmem>>, vector<1x128xf32>
    %21 = vector.broadcast %20 : vector<1x128xf32> to vector<256x128xf32>
    %22 = arith.addf %19, %21 : vector<256x128xf32>
    %cst_17 = arith.constant 0.000000e+00 : f32
    %23 = vector.broadcast %cst_17 : f32 to vector<256x128xf32>
    %24 = arith.maximumf %22, %23 : vector<256x128xf32>
    %25 = arith.truncf %24 : vector<256x128xf32> to vector<256x128xbf16>
    %c0_18 = arith.constant 0 : index
    %c0_19 = arith.constant 0 : index
    %26 = vector.load %arg8[%c0_18, %c0_19] : memref<128x128xbf16, #tpu.memory_space<vmem>>, vector<128x128xbf16>
    %cst_20 = arith.constant dense<0.000000e+00> : vector<256x128xf32>
    %27 = tpu.matmul %25, %26, %cst_20 {dimension_numbers = #tpu.dot_dimension_numbers<[1], [0], [0], [1], [0, 0, 1, 1], [], []>} : vector<256x128xbf16>, vector<128x128xbf16>, vector<256x128xf32> -> vector<256x128xf32>
    %c0_21 = arith.constant 0 : index
    %c0_22 = arith.constant 0 : index
    %28 = vector.load %arg9[%c0_21, %c0_22] : memref<1x128xf32, #tpu.memory_space<vmem>>, vector<1x128xf32>
    %29 = vector.broadcast %28 : vector<1x128xf32> to vector<256x128xf32>
    %30 = arith.addf %27, %29 : vector<256x128xf32>
    %c0_23 = arith.constant 0 : index
    %c0_24 = arith.constant 0 : index
    %31 = vector.load %arg10[%c0_23, %c0_24] : memref<256x128xf32, #tpu.memory_space<vmem>>, vector<256x128xf32>
    tpu.vector_store %arg10[%c0_23, %c0_24], %30 {strides = array<i32>} : memref<256x128xf32, #tpu.memory_space<vmem>>, vector<256x128xf32>,
    return
  }
  func.func @transform_0(%arg0: i32) -> (i32, i32) {
    %c0_i32 = arith.constant 0 : i32
    %c0_i32_0 = arith.constant 0 : i32
    return %arg0, %c0_i32 : i32, i32
  }
  func.func @transform_1(%arg0: i32) -> (i32, i32) {
    %c0_i32 = arith.constant 0 : i32
    %c0_i32_0 = arith.constant 0 : i32
    %c0_i32_1 = arith.constant 0 : i32
    return %c0_i32, %c0_i32_0 : i32, i32
  }
  func.func @transform_2(%arg0: i32) -> (i32, i32) {
    %c0_i32 = arith.constant 0 : i32
    %c0_i32_0 = arith.constant 0 : i32
    %c0_i32_1 = arith.constant 0 : i32
    return %c0_i32, %c0_i32_0 : i32, i32
  }
  func.func @transform_3(%arg0: i32) -> (i32, i32) {
    %c0_i32 = arith.constant 0 : i32
    %c0_i32_0 = arith.constant 0 : i32
    %c0_i32_1 = arith.constant 0 : i32
    return %c0_i32, %c0_i32_0 : i32, i32
  }
  func.func @transform_4(%arg0: i32) -> (i32, i32) {
    %c0_i32 = arith.constant 0 : i32
    %c0_i32_0 = arith.constant 0 : i32
    %c0_i32_1 = arith.constant 0 : i32
    return %c0_i32, %c0_i32_0 : i32, i32
  }
  func.func @transform_5(%arg0: i32) -> (i32, i32) {
    %c0_i32 = arith.constant 0 : i32
    %c0_i32_0 = arith.constant 0 : i32
    %c0_i32_1 = arith.constant 0 : i32
    return %c0_i32, %c0_i32_0 : i32, i32
  }
  func.func @transform_6(%arg0: i32) -> (i32, i32) {
    %c0_i32 = arith.constant 0 : i32
    %c0_i32_0 = arith.constant 0 : i32
    %c0_i32_1 = arith.constant 0 : i32
    return %c0_i32, %c0_i32_0 : i32, i32
  }
  func.func @transform_7(%arg0: i32) -> (i32, i32) {
    %c0_i32 = arith.constant 0 : i32
    %c0_i32_0 = arith.constant 0 : i32
    %c0_i32_1 = arith.constant 0 : i32
    return %c0_i32, %c0_i32_0 : i32, i32
  }
  func.func @transform_8(%arg0: i32) -> (i32, i32) {
    %c0_i32 = arith.constant 0 : i32
    %c0_i32_0 = arith.constant 0 : i32
    %c0_i32_1 = arith.constant 0 : i32
    return %c0_i32, %c0_i32_0 : i32, i32
  }
  func.func @transform_9(%arg0: i32) -> (i32, i32) {
    %c0_i32 = arith.constant 0 : i32
    %c0_i32_0 = arith.constant 0 : i32
    return %arg0, %c0_i32 : i32, i32
  }
}

</mosaic_0001>

<bundles_post_ra>
// kernel: tpu_custom_call.1
= control target key start
LH: loop header
LB: loop body
LE: loop exit
PB: predicated region body
PF: predicated region fallthrough
CT: control target
= control target key end

     0   :  { %14 = vsyncpa [#allocation3], 0  ;;  %s2525_s0 = inlined_call_operand.vmem [shape: f32[512,32], index: 0, kind: input, shape index: {}]   ;;  %s2526_s1 = inlined_call_operand.vmem [shape: bf16[32,128], index: 1, kind: input, shape index: {}]   ;;  %s2527_s2 = inlined_call_operand.vmem [shape: f32[1,128], index: 2, kind: input, shape index: {}]   ;;  %s2528_s3 = inlined_call_operand.vmem [shape: bf16[128,128], index: 3, kind: input, shape index: {}]   ;;  %s2529_s4 = inlined_call_operand.vmem [shape: f32[1,128], index: 4, kind: input, shape index: {}]   ;;  %s2530_s5 = inlined_call_operand.vmem [shape: bf16[128,128], index: 5, kind: input, shape index: {}]   ;;  %s2531_s6 = inlined_call_operand.vmem [shape: f32[1,128], index: 6, kind: input, shape index: {}]   ;;  %s2532_s7 = inlined_call_operand.vmem [shape: bf16[128,128], index: 7, kind: input, shape index: {}]   ;;  %s2533_s8 = inlined_call_operand.vmem [shape: f32[1,128], index: 8, kind: input, shape index: {}]   ;;  %s2534_s9 = inlined_call_operand.hbm [shape: f32[512,128], index: 9, kind: output, shape index: {}]  }
   0x1   :  { %16 = vsyncpa [#allocation3 + $0x1], 0  ;;  %s2091_s30 = smov 0   ;;  %s2093_s10 = smov 0  }
   0x2   :  { %s2095_s11 = smov 0   ;;  %s2097_s12 = smov 0  }
   0x3 LB: > { %s2112_s13 = sadd.s32 4294967295, %s2036_s12   ;;  %s1564_s14 = sadd.s32 4294967294, %s2036_s12   ;;  %s2036_s12 = sphi %s2097_s12, %s2540_s12   ;;  %s2032_s11 = sphi %s2095_s11, %s2539_s11   ;;  %s2028_s10 = sphi %s2093_s10, %s2538_s10   ;;  %s2024_s30 = sphi %s2091_s30, %s2537_s30  }
   0x4   : > { %s2116_s15 = sadd.s32 1, %s2036_s12   ;;  %s223_s16 = sadd.s32 1, %s2032_s11 }
   0x5   : > { %s220_s17 = ssub.s32 %s2036_s12, %s2116_s15  ;;  %p233_p0 = scmp.ne.s32.totalorder %s2032_s11, %s2028_s10 }
   0x6   : > { %p221_p1 = scmp.eq.s32.totalorder %s220_s17, 0  ;;  %p234_p2 = scmp.eq.s32.totalorder %s2112_s13, 1 }
   0x7   : > { %p239_p3 = scmp.ne.s32.totalorder %s2028_s10, %s2024_s30  ;;  %p240_p4 = scmp.eq.s32.totalorder %s1564_s14, 1 }
   0x8   : > { %s2127_s18 = scalar_select %p221_p1, %s2032_s11, %s223_s16  }
   0x9   : > { %p2129_p5 = por %p234_p2, %p233_p0  ;;  %p2133_p6 = por %p240_p4, %p239_p3 }
   0xa   : > { %p1567_p7 = scmp.ge.s32.totalorder %s2036_s12, 1  ;;  %p291_p8 = scmp.lt.s32.totalorder %s2036_s12, 3 }
   0xc   : > { %p292_p9 = pnand %p1567_p7, %p291_p8 }
   0xd   : > { %s1569_s23 = sshll.u32 (!%p292_p9), %s2112_s13, 5  ;;  %s1622_s29 = sshll.u32 (!%p292_p9), %s2112_s13, 12 }
   0xe   : > { %295 = sbr.rel (%p292_p9) target bundleno = 917 (0x395), region = 56  ;;  %p328_p10 = scmp.lt.s32.totalorder (!%p292_p9), %s1569_s23, 63 }
   0xf   : > { %s2476_s22 = scalar_lea.hbm (!%p292_p9), %s2534_s9, %s1622_s29  ;;  %s2038_s24 = smov (!%p292_p9), [#allocation2]  }
  0x13   : > { %v1950_v0 = vld [vmem:[%s2526_s1 + $0x8] sm:$0xff]   ;;  %v1951_v1 = vld [vmem:[%s2526_s1] sm:$0xff]   ;;  %v1952_v2 = vld [vmem:[%s2528_s3 + $0x38] sm:$0xff]   ;;  %s2542_s23 = smov (!%p328_p10, %s1569_s23), 63  ;;  %vm406_vm0 = vcmask 261120  }
  0x14   : > { %1713 = vmatprep.subr.bf16.mxu0 %v1950_v0  ;;  %v1953_v3 = vld [vmem:[%s2528_s3 + $0x30] sm:$0xff]   ;;  %1749 = vmatprep.subr.bf16.mxu1 %v1952_v2  ;;  %s1570_s14 = sshll.u32 %s2542_s23, 3  ;;  %v1954_v4 = vld [vmem:[%s2528_s3 + $0x28] sm:$0xff]   ;;  %v1955_v14 = vld [vmem:[%s2528_s3 + $0x20] sm:$0xff]   ;;  %s324_s23 = sand.u32 1, %s2028_s10  }
  0x15   : > { %1714 = vmatpush3.bf16.msra.mxu0 %v1950_v0  ;;  %1750 = vmatpush3.bf16.msra.mxu1 %v1952_v2  ;;  %s2155_s21 = scalar_lea.vmem %s2525_s0, %s1570_s14  ;;  %v1956_v19 = vld [vmem:[%s2528_s3 + $0x18] sm:$0xff]   ;;  %v1957_v55 = vld [vmem:[%s2528_s3 + $0x10] sm:$0xff]   ;;  %v1958_v56 = vld [vmem:[%s2528_s3 + $0x8] sm:$0xff]   ;;  %s1568_s25 = sshll.u32 %s324_s23, 8 }
  0x16   : > { %1715 = vmatprep.subr.bf16.mxu0 %v1951_v1  ;;  %1751 = vmatprep.subr.bf16.mxu1 %v1953_v3  ;;  %v335_v5 = vld [vmem:[%s2155_s21] sm:$0xff]  ;;  %v336_v6 = vld [vmem:[%s2155_s21 + $0x8] sm:$0xff]  ;;  %v337_v7 = vld [vmem:[%s2155_s21 + $0x10] sm:$0xff]  ;;  %s2409_s28 = scalar_lea.vmem [#allocation2], %s1568_s25  ;;  %s2485_s13 = scalar_lea.sflag [#allocation3], %s324_s23 }
  0x17   : > { %v367_v8 = vpack.c.bf16 %v336_v6, %v335_v5  ;;  %v338_v9 = vld [vmem:[%s2155_s21 + $0x18] sm:$0xff]  ;;  %v339_v10 = vld [vmem:[%s2155_s21 + $0x20] sm:$0xff]  ;;  %v340_v11 = vld [vmem:[%s2155_s21 + $0x28] sm:$0xff]  ;;  %s1502_s14 = sshll.u32 %s2409_s28, 4  ;;  %s1980_s25 = sshll.u32 %s2038_s24, 4  ;;  %s2478_s14 = int_to_ptr.vmem [resolvable:$true] %s1502_s14  ;;  %s1981_s25 = int_to_ptr.vmem [resolvable:$false] %s1980_s25 }
  0x18   : > { %v368_v12 = vpack.c.bf16 %v338_v9, %v337_v7  ;;  %v369_v13 = vpack.c.bf16 %v340_v11, %v339_v10  ;;  %v341_v15 = vld [vmem:[%s2155_s21 + $0x30] sm:$0xff]  ;;  %v342_v16 = vld [vmem:[%s2155_s21 + $0x38] sm:$0xff]  ;;  %v343_v17 = vld [vmem:[%s2155_s21 + $0x40] sm:$0xff]  ;;  %s1982_s26 = scalar_lea.vmem %s1981_s25, 8192  ;;  %p1983_p0 = scmp.lt.s32.totalorder %s2478_s14, %s1981_s25 }
  0x19   : > { %1716 = vmatpush3.bf16.msra.mxu0 %v1951_v1  ;;  %1752 = vmatpush3.bf16.msra.mxu1 %v1953_v3  ;;  %v344_v18 = vld [vmem:[%s2155_s21 + $0x48] sm:$0xff]  ;;  %v370_v20 = vpack.c.bf16 %v342_v16, %v341_v15  ;;  %v345_v22 = vld [vmem:[%s2155_s21 + $0x50] sm:$0xff]  ;;  %v346_v23 = vld [vmem:[%s2155_s21 + $0x58] sm:$0xff] }
  0x1a   : > { %1717 = vmatprep.mubr.msk.bf16.mxu0 %vm406_vm0, %v367_v8  ;;  %1753 = vmatprep.subr.bf16.mxu1 %v1954_v4  ;;  %v371_v21 = vpack.c.bf16 %v344_v18, %v343_v17  ;;  %v347_v24 = vld [vmem:[%s2155_s21 + $0x60] sm:$0xff]  ;;  %v348_v25 = vld [vmem:[%s2155_s21 + $0x68] sm:$0xff]  ;;  %v372_v26 = vpack.c.bf16 %v346_v23, %v345_v22  ;;  %v349_v28 = vld [vmem:[%s2155_s21 + $0x70] sm:$0xff] }
  0x1b   : > { %v373_v27 = vpack.c.bf16 %v348_v25, %v347_v24  ;;  %v350_v29 = vld [vmem:[%s2155_s21 + $0x78] sm:$0xff]  ;;  %v351_v30 = vld [vmem:[%s2155_s21 + $0x80] sm:$0xff]  ;;  %v352_v31 = vld [vmem:[%s2155_s21 + $0x88] sm:$0xff] }
  0x1c   : > { %1718 = vmatmul.mubr.msk.bf16.vlgmr.msra.gmra.mxu0 %vm406_vm0, %v368_v12  ;;  %v374_v32 = vpack.c.bf16 %v350_v29, %v349_v28  ;;  %v375_v33 = vpack.c.bf16 %v352_v31, %v351_v30  ;;  %v353_v34 = vld [vmem:[%s2155_s21 + $0x90] sm:$0xff]  ;;  %v354_v35 = vld [vmem:[%s2155_s21 + $0x98] sm:$0xff]  ;;  %v355_v36 = vld [vmem:[%s2155_s21 + $0xa0] sm:$0xff] }
  0x1d   : > { %1721 = vmatprep.mubr.msk.bf16.mxu0 %vm406_vm0, %v369_v13  ;;  %1754 = vmatpush3.bf16.msra.mxu1 %v1954_v4  ;;  %v356_v37 = vld [vmem:[%s2155_s21 + $0xa8] sm:$0xff]  ;;  %v376_v38 = vpack.c.bf16 %v354_v35, %v353_v34  ;;  %v357_v40 = vld [vmem:[%s2155_s21 + $0xb0] sm:$0xff]  ;;  %v358_v41 = vld [vmem:[%s2155_s21 + $0xb8] sm:$0xff] }
  0x1e   : > { %1755 = vmatprep.subr.bf16.mxu1 %v1955_v14  ;;  %v377_v39 = vpack.c.bf16 %v356_v37, %v355_v36  ;;  %v359_v42 = vld [vmem:[%s2155_s21 + $0xc0] sm:$0xff]  ;;  %v360_v43 = vld [vmem:[%s2155_s21 + $0xc8] sm:$0xff]  ;;  %v378_v44 = vpack.c.bf16 %v358_v41, %v357_v40  ;;  %v361_v46 = vld [vmem:[%s2155_s21 + $0xd0] sm:$0xff] }
  0x1f   : > { %v379_v45 = vpack.c.bf16 %v360_v43, %v359_v42  ;;  %v362_v47 = vld [vmem:[%s2155_s21 + $0xd8] sm:$0xff]  ;;  %v363_v48 = vld [vmem:[%s2155_s21 + $0xe0] sm:$0xff]  ;;  %v364_v49 = vld [vmem:[%s2155_s21 + $0xe8] sm:$0xff] }
  0x20   : > { %v380_v50 = vpack.c.bf16 %v362_v47, %v361_v46  ;;  %v381_v51 = vpack.c.bf16 %v364_v49, %v363_v48  ;;  %v365_v52 = vld [vmem:[%s2155_s21 + $0xf0] sm:$0xff]  ;;  %v366_v53 = vld [vmem:[%s2155_s21 + $0xf8] sm:$0xff]  ;;  %v1959_v57 = vld [vmem:[%s2528_s3] sm:$0xff]   ;;  %s1976_s21 = scalar_lea.vmem %s2478_s14, 4096 }
  0x21   : > { %1756 = vmatpush3.bf16.msra.mxu1 %v1955_v14  ;;  %v382_v54 = vpack.c.bf16 %v366_v53, %v365_v52  ;;  %v1960_v58 = vld [vmem:[%s2530_s5 + $0x38] sm:$0xff]   ;;  %v1961_v59 = vld [vmem:[%s2530_s5 + $0x30] sm:$0xff]   ;;  %v1962_v60 = vld [vmem:[%s2530_s5 + $0x28] sm:$0xff]   ;;  %p1977_p11 = scmp.ne.s32.totalorder %s2478_s14, %s1976_s21  ;;  %p1984_p1 = scmp.lt.s32.totalorder %s1982_s26, %s1976_s21 }
  0x22   : > { %1757 = vmatprep.subr.bf16.mxu1 %v1956_v19  ;;  %1797 = vmatprep.subr.bf16.mxu0 %v1960_v58  ;;  %v1963_v61 = vld [vmem:[%s2530_s5 + $0x20] sm:$0xff]   ;;  %v1964_v62 = vld [vmem:[%s2530_s5 + $0x18] sm:$0xff]   ;;  %v1965_v63 = vld [vmem:[%s2530_s5 + $0x10] sm:$0xff]  }
  0x23   : > { %1798 = vmatpush3.bf16.msra.mxu0 %v1960_v58  ;;  %v1966_v0 = vld [vmem:[%s2530_s5 + $0x8] sm:$0xff]   ;;  %v2247_v3 = vld [vmem:[%s2527_s2] ss:$0 sm:$0xff]  ;;  %p1978_p12 = pnand %p1977_p11, %p2129_p5  ;;  %p1985_p2 = por %p1984_p1, %p1983_p0 }
  0x24   : > { %1722 = vmatmul.mubr.msk.bf16.gmra.mxu0 %vm406_vm0, %v370_v20  ;;  %1799 = vmatprep.subr.bf16.mxu0 %v1961_v59 }
  0x25   : > { %1725 = vmatprep.mubr.msk.bf16.mxu0 %vm406_vm0, %v371_v21  ;;  %1758 = vmatpush3.bf16.msra.mxu1 %v1956_v19  ;;  %p1979_p13 = pneg %p1978_p12 }
  0x26   : > { %1759 = vmatprep.subr.bf16.mxu1 %v1957_v55 }
  0x27   : > { %1800 = vmatpush3.bf16.msra.mxu0 %v1961_v59  ;;  %p1986_p3 = pnand %p1985_p2, %p1979_p13 }
  0x28   : > { %1801 = vmatprep.subr.bf16.mxu0 %v1962_v60 }
  0x29   : > { %1760 = vmatpush3.bf16.msra.mxu1 %v1957_v55 }
  0x2a   : > { %1761 = vmatprep.subr.bf16.mxu1 %v1958_v56 }
  0x2b   : > { %1802 = vmatpush3.bf16.msra.mxu0 %v1962_v60 }
  0x2c   : > { %1726 = vmatmul.mubr.msk.bf16.gmra.mxu0 %vm406_vm0, %v372_v26  ;;  %1803 = vmatprep.subr.bf16.mxu0 %v1963_v61 }
  0x2d   : > { %1729 = vmatprep.mubr.msk.bf16.mxu0 %vm406_vm0, %v373_v27  ;;  %1762 = vmatpush3.bf16.msra.mxu1 %v1958_v56 }
  0x2e   : > { %1763 = vmatprep.subr.bf16.mxu1 %v1959_v57 }
  0x2f   : > { %1804 = vmatpush3.bf16.msra.mxu0 %v1963_v61 }
  0x30   : > { %1805 = vmatprep.subr.bf16.mxu0 %v1964_v62 }
  0x31   : > { %1764 = vmatpush3.bf16.msra.mxu1 %v1959_v57 }
  0x33   : > { %1806 = vmatpush3.bf16.msra.mxu0 %v1964_v62 }
  0x34   : > { %1730 = vmatmul.mubr.msk.bf16.gmra.mxu0 %vm406_vm0, %v374_v32  ;;  %1807 = vmatprep.subr.bf16.mxu0 %v1965_v63 }
  0x35   : > { %1733 = vmatprep.mubr.msk.bf16.mxu0 %vm406_vm0, %v375_v33 }
  0x37   : > { %1808 = vmatpush3.bf16.msra.mxu0 %v1965_v63 }
  0x38   : > { %1809 = vmatprep.subr.bf16.mxu0 %v1966_v0 }
  0x3b   : > { %1810 = vmatpush3.bf16.msra.mxu0 %v1966_v0 }
  0x3c   : > { %1734 = vmatmul.mubr.msk.bf16.gmra.mxu0 %vm406_vm0, %v376_v38 }
  0x3d   : > { %1737 = vmatprep.mubr.msk.bf16.mxu0 %vm406_vm0, %v377_v39 }
  0x44   : > { %1738 = vmatmul.mubr.msk.bf16.gmra.mxu0 %vm406_vm0, %v378_v44 }
  0x45   : > { %1741 = vmatprep.mubr.msk.bf16.mxu0 %vm406_vm0, %v379_v45 }
  0x4c   : > { %1742 = vmatmul.mubr.msk.bf16.gmra.mxu0 %vm406_vm0, %v380_v50 }
  0x4d   : > { %1745 = vmatprep.mubr.msk.bf16.mxu0 %vm406_vm0, %v381_v51 }
  0x54   : > { %1746 = vmatmul.mubr.msk.bf16.gmra.mxu0 %vm406_vm0, %v382_v54 }
  0xdc   : > { %v1719_v1 = vpop.f32.mrf.mxu0 }
  0xdd   : > { %v498_v7 = vadd.f32 %v1719_v1, %v2247_v3 }
  0xde   : > { %v489_v2 = vpop.f32.mrf.mxu0 }
  0xdf   : > { %v490_v5 = vadd.f32 %v2247_v3, %v489_v2  ;;  %v618_v14 = vmax.f32 %v498_v7, 0.0 }
  0xe0   : > { %v1720_v4 = vpop.f32.mrf.mxu0 }
  0xe1   : > { %v501_v6 = vadd.f32 %v1720_v4, %v2247_v3  ;;  %v616_v12 = vmax.f32 %v490_v5, 0.0 }
  0xe2   : > { %v492_v8 = vpop.f32.mrf.mxu0 }
  0xe3   : > { %v493_v9 = vadd.f32 %v2247_v3, %v492_v8  ;;  %v619_v10 = vmax.f32 %v501_v6, 0.0 }
  0xe4   : > { %v1723_v11 = vpop.f32.mrf.mxu0 }
  0xe5   : > { %v617_v13 = vmax.f32 %v493_v9, 0.0  ;;  %v649_v17 = vpack.c.bf16 %v619_v10, %v618_v14  ;;  %v514_v21 = vadd.f32 %v1723_v11, %v2247_v3 }
  0xe6   : > { %v505_v15 = vpop.f32.mrf.mxu0 }
  0xe7   : > { %v648_v16 = vpack.c.bf16 %v617_v13, %v616_v12  ;;  %v506_v19 = vadd.f32 %v2247_v3, %v505_v15  ;;  %v622_v28 = vmax.f32 %v514_v21, 0.0 }
  0xe8   : > { %v1724_v18 = vpop.f32.mrf.mxu0 }
  0xe9   : > { %v517_v20 = vadd.f32 %v1724_v18, %v2247_v3  ;;  %1765 = vmatprep.mubr.bf16.mxu1 %v648_v16  ;;  %v620_v26 = vmax.f32 %v506_v19, 0.0 }
  0xea   : > { %v508_v22 = vpop.f32.mrf.mxu0  ;;  %1766 = vmatmul.mubr.bf16.vlgmr.msra.gmra.mxu1 %v649_v17 }
  0xeb   : > { %v509_v23 = vadd.f32 %v2247_v3, %v508_v22  ;;  %v623_v24 = vmax.f32 %v517_v20, 0.0 }
  0xec   : > { %v1727_v25 = vpop.f32.mrf.mxu0 }
  0xed   : > { %v621_v27 = vmax.f32 %v509_v23, 0.0  ;;  %v651_v31 = vpack.c.bf16 %v623_v24, %v622_v28  ;;  %v530_v35 = vadd.f32 %v1727_v25, %v2247_v3 }
  0xee   : > { %v521_v29 = vpop.f32.mrf.mxu0 }
  0xef   : > { %v650_v30 = vpack.c.bf16 %v621_v27, %v620_v26  ;;  %v522_v33 = vadd.f32 %v2247_v3, %v521_v29  ;;  %v626_v42 = vmax.f32 %v530_v35, 0.0 }
  0xf0   : > { %v1728_v32 = vpop.f32.mrf.mxu0 }
  0xf1   : > { %v533_v34 = vadd.f32 %v1728_v32, %v2247_v3  ;;  %1769 = vmatprep.mubr.bf16.mxu1 %v650_v30  ;;  %v624_v40 = vmax.f32 %v522_v33, 0.0 }
  0xf2   : > { %v524_v36 = vpop.f32.mrf.mxu0  ;;  %1770 = vmatmul.mubr.bf16.gmra.mxu1 %v651_v31 }
  0xf3   : > { %v525_v37 = vadd.f32 %v2247_v3, %v524_v36  ;;  %v627_v38 = vmax.f32 %v533_v34, 0.0 }
  0xf4   : > { %v1731_v39 = vpop.f32.mrf.mxu0 }
  0xf5   : > { %v625_v41 = vmax.f32 %v525_v37, 0.0  ;;  %v653_v45 = vpack.c.bf16 %v627_v38, %v626_v42  ;;  %v546_v49 = vadd.f32 %v1731_v39, %v2247_v3 }
  0xf6   : > { %v537_v43 = vpop.f32.mrf.mxu0 }
  0xf7   : > { %v652_v44 = vpack.c.bf16 %v625_v41, %v624_v40  ;;  %v538_v47 = vadd.f32 %v2247_v3, %v537_v43  ;;  %v630_v56 = vmax.f32 %v546_v49, 0.0 }
  0xf8   : > { %v1732_v46 = vpop.f32.mrf.mxu0 }
  0xf9   : > { %v549_v48 = vadd.f32 %v1732_v46, %v2247_v3  ;;  %1773 = vmatprep.mubr.bf16.mxu1 %v652_v44  ;;  %v628_v54 = vmax.f32 %v538_v47, 0.0 }
  0xfa   : > { %v540_v50 = vpop.f32.mrf.mxu0  ;;  %1774 = vmatmul.mubr.bf16.gmra.mxu1 %v653_v45 }
  0xfb   : > { %v541_v51 = vadd.f32 %v2247_v3, %v540_v50  ;;  %v631_v52 = vmax.f32 %v549_v48, 0.0 }
  0xfc   : > { %v1735_v53 = vpop.f32.mrf.mxu0 }
  0xfd   : > { %v629_v55 = vmax.f32 %v541_v51, 0.0  ;;  %v655_v59 = vpack.c.bf16 %v631_v52, %v630_v56  ;;  %v562_v63 = vadd.f32 %v1735_v53, %v2247_v3  ;;  %v1967_v51 = vld [vmem:[%s2530_s5] sm:$0xff]   ;;  %v1968_v52 = vld [vmem:[%s2532_s7 + $0x38] sm:$0xff]   ;;  %v1970_v53 = vld [vmem:[%s2532_s7 + $0x28] sm:$0xff]  }
  0xfe   : > { %v553_v57 = vpop.f32.mrf.mxu0  ;;  %1811 = vmatprep.subr.bf16.mxu0 %v1967_v51  ;;  %1893 = vmatprep.subr.bf16.mxu1 %v1968_v52  ;;  %v2309_v56 = vld [vmem:[%s2532_s7 + $0x10] sm:$0xff]  }
  0xff   : > { %v654_v58 = vpack.c.bf16 %v629_v55, %v628_v54  ;;  %v554_v61 = vadd.f32 %v2247_v3, %v553_v57  ;;  %v634_v7 = vmax.f32 %v562_v63, 0.0  ;;  %1812 = vmatpush3.bf16.msra.mxu0 %v1967_v51  ;;  %1901 = vmatpush3.bf16.msra.mxu1 %v1968_v52  ;;  %v2296_v54 = vld [vmem:[%s2532_s7 + $0x20] sm:$0xff]   ;;  %v2302_v55 = vld [vmem:[%s2532_s7 + $0x18] sm:$0xff]  }
 0x100   : > { %v1736_v60 = vpop.f32.mrf.mxu0  ;;  %1845 = vmatprep.subr.bf16.mxu0 %v1968_v52 }
 0x101   : > { %v565_v62 = vadd.f32 %v1736_v60, %v2247_v3  ;;  %1777 = vmatprep.mubr.bf16.mxu1 %v654_v58  ;;  %v632_v5 = vmax.f32 %v554_v61, 0.0 }
 0x102   : > { %v556_v0 = vpop.f32.mrf.mxu0  ;;  %1778 = vmatmul.mubr.bf16.gmra.mxu1 %v655_v59  ;;  %v2317_v59 = vld [vmem:[%s2529_s4] ss:$0 sm:$0xff] }
 0x103   : > { %v557_v1 = vadd.f32 %v2247_v3, %v556_v0  ;;  %v635_v2 = vmax.f32 %v565_v62, 0.0 }
 0x104   : > { %v1739_v4 = vpop.f32.mrf.mxu0 }
 0x105   : > { %v633_v6 = vmax.f32 %v557_v1, 0.0  ;;  %v657_v10 = vpack.c.bf16 %v635_v2, %v634_v7  ;;  %v578_v14 = vadd.f32 %v1739_v4, %v2247_v3 }
 0x106   : > { %v569_v8 = vpop.f32.mrf.mxu0 }
 0x107   : > { %v656_v9 = vpack.c.bf16 %v633_v6, %v632_v5  ;;  %v570_v12 = vadd.f32 %v2247_v3, %v569_v8  ;;  %v638_v21 = vmax.f32 %v578_v14, 0.0 }
 0x108   : > { %v1740_v11 = vpop.f32.mrf.mxu0 }
 0x109   : > { %v581_v13 = vadd.f32 %v1740_v11, %v2247_v3  ;;  %1781 = vmatprep.mubr.bf16.mxu1 %v656_v9  ;;  %v636_v19 = vmax.f32 %v570_v12, 0.0 }
 0x10a   : > { %v572_v15 = vpop.f32.mrf.mxu0  ;;  %1782 = vmatmul.mubr.bf16.gmra.mxu1 %v657_v10 }
 0x10b   : > { %v573_v16 = vadd.f32 %v2247_v3, %v572_v15  ;;  %v639_v17 = vmax.f32 %v581_v13, 0.0 }
 0x10c   : > { %v1743_v18 = vpop.f32.mrf.mxu0 }
 0x10d   : > { %v637_v20 = vmax.f32 %v573_v16, 0.0  ;;  %v659_v24 = vpack.c.bf16 %v639_v17, %v638_v21  ;;  %v594_v28 = vadd.f32 %v1743_v18, %v2247_v3 }
 0x10e   : > { %v585_v22 = vpop.f32.mrf.mxu0 }
 0x10f   : > { %v658_v23 = vpack.c.bf16 %v637_v20, %v636_v19  ;;  %v586_v26 = vadd.f32 %v2247_v3, %v585_v22  ;;  %v642_v35 = vmax.f32 %v594_v28, 0.0 }
 0x110   : > { %v1744_v25 = vpop.f32.mrf.mxu0 }
 0x111   : > { %v597_v27 = vadd.f32 %v1744_v25, %v2247_v3  ;;  %1785 = vmatprep.mubr.bf16.mxu1 %v658_v23  ;;  %v640_v33 = vmax.f32 %v586_v26, 0.0 }
 0x112   : > { %v588_v29 = vpop.f32.mrf.mxu0  ;;  %1786 = vmatmul.mubr.bf16.gmra.mxu1 %v659_v24 }
 0x113   : > { %v589_v30 = vadd.f32 %v2247_v3, %v588_v29  ;;  %v643_v31 = vmax.f32 %v597_v27, 0.0 }
 0x114   : > { %v1747_v32 = vpop.f32.mrf.mxu0 }
 0x115   : > { %v641_v34 = vmax.f32 %v589_v30, 0.0  ;;  %v661_v38 = vpack.c.bf16 %v643_v31, %v642_v35  ;;  %v610_v42 = vadd.f32 %v1747_v32, %v2247_v3 }
 0x116   : > { %v601_v36 = vpop.f32.mrf.mxu0 }
 0x117   : > { %v660_v37 = vpack.c.bf16 %v641_v34, %v640_v33  ;;  %v602_v40 = vadd.f32 %v2247_v3, %v601_v36  ;;  %v646_v48 = vmax.f32 %v610_v42, 0.0 }
 0x118   : > { %v1748_v39 = vpop.f32.mrf.mxu0 }
 0x119   : > { %v613_v41 = vadd.f32 %v1748_v39, %v2247_v3  ;;  %1789 = vmatprep.mubr.bf16.mxu1 %v660_v37  ;;  %v644_v46 = vmax.f32 %v602_v40, 0.0 }
 0x11a   : > { %v604_v43 = vpop.f32.mrf.mxu0  ;;  %1790 = vmatmul.mubr.bf16.gmra.mxu1 %v661_v38 }
 0x11b   : > { %v605_v44 = vadd.f32 %v2247_v3, %v604_v43  ;;  %v647_v45 = vmax.f32 %v613_v41, 0.0  ;;  %v1969_v3 = vld [vmem:[%s2532_s7 + $0x30] sm:$0xff]  }
 0x11c   : > { %1894 = vmatprep.subr.bf16.mxu1 %v1969_v3 }
 0x11d   : > { %v645_v47 = vmax.f32 %v605_v44, 0.0  ;;  %v663_v50 = vpack.c.bf16 %v647_v45, %v646_v48  ;;  %1902 = vmatpush3.bf16.msra.mxu1 %v1969_v3 }
 0x11e   : > { %1895 = vmatprep.subr.bf16.mxu1 %v1970_v53 }
 0x11f   : > { %v662_v49 = vpack.c.bf16 %v645_v47, %v644_v46 }
 0x121   : > { %1793 = vmatprep.mubr.bf16.mxu1 %v662_v49  ;;  %1903 = vmatpush3.bf16.msra.mxu1 %v1970_v53 }
 0x122   : > { %1794 = vmatmul.mubr.bf16.gmra.mxu1 %v663_v50  ;;  %1896 = vmatprep.subr.bf16.mxu1 %v2296_v54 }
 0x125   : > { %1904 = vmatpush3.bf16.msra.mxu1 %v2296_v54 }
 0x126   : > { %1897 = vmatprep.subr.bf16.mxu1 %v2302_v55 }
 0x129   : > { %1905 = vmatpush3.bf16.msra.mxu1 %v2302_v55 }
 0x12a   : > { %1898 = vmatprep.subr.bf16.mxu1 %v2309_v56 }
 0x12d   : > { %1906 = vmatpush3.bf16.msra.mxu1 %v2309_v56 }
 0x1aa   : > { %v1767_v57 = vpop.f32.mrf.mxu1 }
 0x1ab   : > { %v778_v63 = vadd.f32 %v1767_v57, %v2317_v59 }
 0x1ac   : > { %v769_v58 = vpop.f32.mrf.mxu1 }
 0x1ad   : > { %v770_v61 = vadd.f32 %v2317_v59, %v769_v58  ;;  %v898_v7 = vmax.f32 %v778_v63, 0.0 }
 0x1ae   : > { %v1768_v60 = vpop.f32.mrf.mxu1 }
 0x1af   : > { %v781_v62 = vadd.f32 %v1768_v60, %v2317_v59  ;;  %v896_v5 = vmax.f32 %v770_v61, 0.0 }
 0x1b0   : > { %v772_v0 = vpop.f32.mrf.mxu1 }
 0x1b1   : > { %v773_v1 = vadd.f32 %v2317_v59, %v772_v0  ;;  %v899_v2 = vmax.f32 %v781_v62, 0.0 }
 0x1b2   : > { %v1771_v4 = vpop.f32.mrf.mxu1 }
 0x1b3   : > { %v897_v6 = vmax.f32 %v773_v1, 0.0  ;;  %v929_v10 = vpack.c.bf16 %v899_v2, %v898_v7  ;;  %v794_v14 = vadd.f32 %v1771_v4, %v2317_v59 }
 0x1b4   : > { %v785_v8 = vpop.f32.mrf.mxu1 }
 0x1b5   : > { %v928_v9 = vpack.c.bf16 %v897_v6, %v896_v5  ;;  %v786_v12 = vadd.f32 %v2317_v59, %v785_v8  ;;  %v902_v21 = vmax.f32 %v794_v14, 0.0 }
 0x1b6   : > { %v1772_v11 = vpop.f32.mrf.mxu1 }
 0x1b7   : > { %v797_v13 = vadd.f32 %v1772_v11, %v2317_v59  ;;  %1813 = vmatprep.mubr.bf16.mxu0 %v928_v9  ;;  %v900_v19 = vmax.f32 %v786_v12, 0.0 }
 0x1b8   : > { %v788_v15 = vpop.f32.mrf.mxu1  ;;  %1814 = vmatmul.mubr.bf16.vlgmr.msra.gmra.mxu0 %v929_v10 }
 0x1b9   : > { %v789_v16 = vadd.f32 %v2317_v59, %v788_v15  ;;  %1846 = vmatpush3.bf16.msra.mxu0 %v1968_v52  ;;  %v903_v17 = vmax.f32 %v797_v13, 0.0 }
 0x1ba   : > { %v1775_v18 = vpop.f32.mrf.mxu1  ;;  %1847 = vmatprep.subr.bf16.mxu0 %v1969_v3 }
 0x1bb   : > { %v901_v20 = vmax.f32 %v789_v16, 0.0  ;;  %v931_v24 = vpack.c.bf16 %v903_v17, %v902_v21  ;;  %v810_v28 = vadd.f32 %v1775_v18, %v2317_v59 }
 0x1bc   : > { %v801_v22 = vpop.f32.mrf.mxu1 }
 0x1bd   : > { %v930_v23 = vpack.c.bf16 %v901_v20, %v900_v19  ;;  %1848 = vmatpush3.bf16.msra.mxu0 %v1969_v3  ;;  %v802_v26 = vadd.f32 %v2317_v59, %v801_v22  ;;  %v906_v35 = vmax.f32 %v810_v28, 0.0 }
 0x1be   : > { %v1776_v25 = vpop.f32.mrf.mxu1  ;;  %1849 = vmatprep.subr.bf16.mxu0 %v1970_v53 }
 0x1bf   : > { %v813_v27 = vadd.f32 %v1776_v25, %v2317_v59  ;;  %1817 = vmatprep.mubr.bf16.mxu0 %v930_v23  ;;  %v904_v33 = vmax.f32 %v802_v26, 0.0 }
 0x1c0   : > { %v804_v29 = vpop.f32.mrf.mxu1  ;;  %1818 = vmatmul.mubr.bf16.gmra.mxu0 %v931_v24 }
 0x1c1   : > { %v805_v30 = vadd.f32 %v2317_v59, %v804_v29  ;;  %1850 = vmatpush3.bf16.msra.mxu0 %v1970_v53  ;;  %v907_v31 = vmax.f32 %v813_v27, 0.0 }
 0x1c2   : > { %v1779_v32 = vpop.f32.mrf.mxu1  ;;  %1851 = vmatprep.subr.bf16.mxu0 %v2296_v54 }
 0x1c3   : > { %v905_v34 = vmax.f32 %v805_v30, 0.0  ;;  %v933_v38 = vpack.c.bf16 %v907_v31, %v906_v35  ;;  %v826_v42 = vadd.f32 %v1779_v32, %v2317_v59 }
 0x1c4   : > { %v817_v36 = vpop.f32.mrf.mxu1 }
 0x1c5   : > { %v932_v37 = vpack.c.bf16 %v905_v34, %v904_v33  ;;  %1852 = vmatpush3.bf16.msra.mxu0 %v2296_v54  ;;  %v818_v40 = vadd.f32 %v2317_v59, %v817_v36  ;;  %v910_v49 = vmax.f32 %v826_v42, 0.0 }
 0x1c6   : > { %v1780_v39 = vpop.f32.mrf.mxu1  ;;  %1853 = vmatprep.subr.bf16.mxu0 %v2302_v55 }
 0x1c7   : > { %v829_v41 = vadd.f32 %v1780_v39, %v2317_v59  ;;  %1821 = vmatprep.mubr.bf16.mxu0 %v932_v37  ;;  %v908_v47 = vmax.f32 %v818_v40, 0.0 }
 0x1c8   : > { %v820_v43 = vpop.f32.mrf.mxu1  ;;  %1822 = vmatmul.mubr.bf16.gmra.mxu0 %v933_v38 }
 0x1c9   : > { %v821_v44 = vadd.f32 %v2317_v59, %v820_v43  ;;  %1854 = vmatpush3.bf16.msra.mxu0 %v2302_v55  ;;  %v911_v45 = vmax.f32 %v829_v41, 0.0 }
 0x1ca   : > { %v1783_v46 = vpop.f32.mrf.mxu1  ;;  %1855 = vmatprep.subr.bf16.mxu0 %v2309_v56 }
 0x1cb   : > { %v909_v48 = vmax.f32 %v821_v44, 0.0  ;;  %v935_v52 = vpack.c.bf16 %v911_v45, %v910_v49  ;;  %v842_v55 = vadd.f32 %v1783_v46, %v2317_v59  ;;  %v1974_v44 = vld [vmem:[%s2532_s7 + $0x8] sm:$0xff]  }
 0x1cc   : > { %v833_v50 = vpop.f32.mrf.mxu1  ;;  %1899 = vmatprep.subr.bf16.mxu1 %v1974_v44 }
 0x1cd   : > { %v934_v51 = vpack.c.bf16 %v909_v48, %v908_v47  ;;  %1856 = vmatpush3.bf16.msra.mxu0 %v2309_v56  ;;  %v834_v53 = vadd.f32 %v2317_v59, %v833_v50  ;;  %v914_v0 = vmax.f32 %v842_v55, 0.0  ;;  %1907 = vmatpush3.bf16.msra.mxu1 %v1974_v44  ;;  %v2366_v47 = vld [vmem:[%s2531_s6] ss:$0 sm:$0xff] }
 0x1ce   : > { %v1784_v3 = vpop.f32.mrf.mxu1  ;;  %1857 = vmatprep.subr.bf16.mxu0 %v1974_v44 }
 0x1cf   : > { %v845_v54 = vadd.f32 %v1784_v3, %v2317_v59  ;;  %1825 = vmatprep.mubr.bf16.mxu0 %v934_v51  ;;  %v912_v62 = vmax.f32 %v834_v53, 0.0 }
 0x1d0   : > { %v836_v57 = vpop.f32.mrf.mxu1  ;;  %1826 = vmatmul.mubr.bf16.gmra.mxu0 %v935_v52 }
 0x1d1   : > { %v837_v58 = vadd.f32 %v2317_v59, %v836_v57  ;;  %v915_v60 = vmax.f32 %v845_v54, 0.0  ;;  %1858 = vmatpush3.bf16.msra.mxu0 %v1974_v44 }
 0x1d2   : > { %v1787_v61 = vpop.f32.mrf.mxu1 }
 0x1d3   : > { %v913_v63 = vmax.f32 %v837_v58, 0.0  ;;  %v937_v2 = vpack.c.bf16 %v915_v60, %v914_v0  ;;  %v858_v7 = vadd.f32 %v1787_v61, %v2317_v59 }
 0x1d4   : > { %v849_v1 = vpop.f32.mrf.mxu1 }
 0x1d5   : > { %v936_v56 = vpack.c.bf16 %v913_v63, %v912_v62  ;;  %v850_v5 = vadd.f32 %v2317_v59, %v849_v1  ;;  %v918_v14 = vmax.f32 %v858_v7, 0.0 }
 0x1d6   : > { %v1788_v4 = vpop.f32.mrf.mxu1 }
 0x1d7   : > { %v861_v6 = vadd.f32 %v1788_v4, %v2317_v59  ;;  %1829 = vmatprep.mubr.bf16.mxu0 %v936_v56  ;;  %v916_v12 = vmax.f32 %v850_v5, 0.0 }
 0x1d8   : > { %v852_v8 = vpop.f32.mrf.mxu1  ;;  %1830 = vmatmul.mubr.bf16.gmra.mxu0 %v937_v2 }
 0x1d9   : > { %v853_v9 = vadd.f32 %v2317_v59, %v852_v8  ;;  %v919_v10 = vmax.f32 %v861_v6, 0.0 }
 0x1da   : > { %v1791_v11 = vpop.f32.mrf.mxu1 }
 0x1db   : > { %v917_v13 = vmax.f32 %v853_v9, 0.0  ;;  %v939_v17 = vpack.c.bf16 %v919_v10, %v918_v14  ;;  %v874_v21 = vadd.f32 %v1791_v11, %v2317_v59 }
 0x1dc   : > { %v865_v15 = vpop.f32.mrf.mxu1 }
 0x1dd   : > { %v938_v16 = vpack.c.bf16 %v917_v13, %v916_v12  ;;  %v866_v19 = vadd.f32 %v2317_v59, %v865_v15  ;;  %v922_v28 = vmax.f32 %v874_v21, 0.0 }
 0x1de   : > { %v1792_v18 = vpop.f32.mrf.mxu1 }
 0x1df   : > { %v877_v20 = vadd.f32 %v1792_v18, %v2317_v59  ;;  %1833 = vmatprep.mubr.bf16.mxu0 %v938_v16  ;;  %v920_v26 = vmax.f32 %v866_v19, 0.0 }
 0x1e0   : > { %v868_v22 = vpop.f32.mrf.mxu1  ;;  %1834 = vmatmul.mubr.bf16.gmra.mxu0 %v939_v17 }
 0x1e1   : > { %v869_v23 = vadd.f32 %v2317_v59, %v868_v22  ;;  %v923_v24 = vmax.f32 %v877_v20, 0.0 }
 0x1e2   : > { %v1795_v25 = vpop.f32.mrf.mxu1 }
 0x1e3   : > { %v921_v27 = vmax.f32 %v869_v23, 0.0  ;;  %v941_v31 = vpack.c.bf16 %v923_v24, %v922_v28  ;;  %v890_v35 = vadd.f32 %v1795_v25, %v2317_v59 }
 0x1e4   : > { %v881_v29 = vpop.f32.mrf.mxu1 }
 0x1e5   : > { %v940_v30 = vpack.c.bf16 %v921_v27, %v920_v26  ;;  %v882_v33 = vadd.f32 %v2317_v59, %v881_v29  ;;  %v926_v41 = vmax.f32 %v890_v35, 0.0 }
 0x1e6   : > { %v1796_v32 = vpop.f32.mrf.mxu1 }
 0x1e7   : > { %v893_v34 = vadd.f32 %v1796_v32, %v2317_v59  ;;  %1837 = vmatprep.mubr.bf16.mxu0 %v940_v30  ;;  %v924_v39 = vmax.f32 %v882_v33, 0.0 }
 0x1e8   : > { %v884_v36 = vpop.f32.mrf.mxu1  ;;  %1838 = vmatmul.mubr.bf16.gmra.mxu0 %v941_v31 }
 0x1e9   : > { %v885_v37 = vadd.f32 %v2317_v59, %v884_v36  ;;  %v927_v38 = vmax.f32 %v893_v34, 0.0  ;;  %v1975_v59 = vld [vmem:[%s2532_s7] sm:$0xff]  }
 0x1ea   : > { %1859 = vmatprep.subr.bf16.mxu0 %v1975_v59  ;;  %1900 = vmatprep.subr.bf16.mxu1 %v1975_v59 }
 0x1eb   : > { %v925_v40 = vmax.f32 %v885_v37, 0.0  ;;  %v943_v43 = vpack.c.bf16 %v927_v38, %v926_v41  ;;  %1860 = vmatpush3.bf16.msra.mxu0 %v1975_v59  ;;  %1908 = vmatpush3.bf16.msra.mxu1 %v1975_v59 }
 0x1ed   : > { %v942_v42 = vpack.c.bf16 %v925_v40, %v924_v39 }
 0x1ef   : > { %1841 = vmatprep.mubr.bf16.mxu0 %v942_v42 }
 0x1f0   : > { %1842 = vmatmul.mubr.bf16.gmra.mxu0 %v943_v43 }
 0x278   : > { %v1815_v45 = vpop.f32.mrf.mxu0 }
 0x279   : > { %v1058_v51 = vadd.f32 %v1815_v45, %v2366_v47 }
 0x27a   : > { %v1049_v46 = vpop.f32.mrf.mxu0 }
 0x27b   : > { %v1050_v49 = vadd.f32 %v2366_v47, %v1049_v46  ;;  %v1178_v58 = vmax.f32 %v1058_v51, 0.0 }
 0x27c   : > { %v1816_v48 = vpop.f32.mrf.mxu0 }
 0x27d   : > { %v1061_v50 = vadd.f32 %v1816_v48, %v2366_v47  ;;  %v1176_v55 = vmax.f32 %v1050_v49, 0.0 }
 0x27e   : > { %v1052_v52 = vpop.f32.mrf.mxu0 }
 0x27f   : > { %v1053_v3 = vadd.f32 %v2366_v47, %v1052_v52  ;;  %v1179_v53 = vmax.f32 %v1061_v50, 0.0 }
 0x280   : > { %v1819_v54 = vpop.f32.mrf.mxu0 }
 0x281   : > { %v1177_v57 = vmax.f32 %v1053_v3, 0.0  ;;  %v1209_v62 = vpack.c.bf16 %v1179_v53, %v1178_v58  ;;  %v1074_v56 = vadd.f32 %v1819_v54, %v2366_v47 }
 0x282   : > { %v1065_v60 = vpop.f32.mrf.mxu0 }
 0x283   : > { %v1208_v61 = vpack.c.bf16 %v1177_v57, %v1176_v55  ;;  %v1066_v0 = vadd.f32 %v2366_v47, %v1065_v60  ;;  %v1182_v9 = vmax.f32 %v1074_v56, 0.0 }
 0x284   : > { %v1820_v63 = vpop.f32.mrf.mxu0 }
 0x285   : > { %v1077_v1 = vadd.f32 %v1820_v63, %v2366_v47  ;;  %1861 = vmatprep.mubr.bf16.mxu0 %v1208_v61  ;;  %v1180_v7 = vmax.f32 %v1066_v0, 0.0 }
 0x286   : > { %v1068_v2 = vpop.f32.mrf.mxu0  ;;  %1862 = vmatmul.mubr.bf16.vlgmr.msra.gmra.mxu0 %v1209_v62 }
 0x287   : > { %v1069_v4 = vadd.f32 %v2366_v47, %v1068_v2  ;;  %v1183_v5 = vmax.f32 %v1077_v1, 0.0 }
 0x288   : > { %v1823_v6 = vpop.f32.mrf.mxu0 }
 0x289   : > { %v1181_v8 = vmax.f32 %v1069_v4, 0.0  ;;  %v1211_v12 = vpack.c.bf16 %v1183_v5, %v1182_v9  ;;  %v1090_v16 = vadd.f32 %v1823_v6, %v2366_v47 }
 0x28a   : > { %v1081_v10 = vpop.f32.mrf.mxu0 }
 0x28b   : > { %v1210_v11 = vpack.c.bf16 %v1181_v8, %v1180_v7  ;;  %v1082_v14 = vadd.f32 %v2366_v47, %v1081_v10  ;;  %v1186_v23 = vmax.f32 %v1090_v16, 0.0 }
 0x28c   : > { %v1824_v13 = vpop.f32.mrf.mxu0 }
 0x28d   : > { %v1093_v15 = vadd.f32 %v1824_v13, %v2366_v47  ;;  %1865 = vmatprep.mubr.bf16.mxu1 %v1210_v11  ;;  %v1184_v21 = vmax.f32 %v1082_v14, 0.0 }
 0x28e   : > { %v1084_v17 = vpop.f32.mrf.mxu0  ;;  %1866 = vmatmul.mubr.bf16.vlgmr.msra.gmra.mxu1 %v1211_v12 }
 0x28f   : > { %v1085_v18 = vadd.f32 %v2366_v47, %v1084_v17  ;;  %v1187_v19 = vmax.f32 %v1093_v15, 0.0 }
 0x290   : > { %v1827_v20 = vpop.f32.mrf.mxu0 }
 0x291   : > { %v1185_v22 = vmax.f32 %v1085_v18, 0.0  ;;  %v1213_v26 = vpack.c.bf16 %v1187_v19, %v1186_v23  ;;  %v1106_v30 = vadd.f32 %v1827_v20, %v2366_v47 }
 0x292   : > { %v1097_v24 = vpop.f32.mrf.mxu0 }
 0x293   : > { %v1212_v25 = vpack.c.bf16 %v1185_v22, %v1184_v21  ;;  %v1098_v28 = vadd.f32 %v2366_v47, %v1097_v24  ;;  %v1190_v37 = vmax.f32 %v1106_v30, 0.0 }
 0x294   : > { %v1828_v27 = vpop.f32.mrf.mxu0 }
 0x295   : > { %v1109_v29 = vadd.f32 %v1828_v27, %v2366_v47  ;;  %1869 = vmatprep.mubr.bf16.mxu1 %v1212_v25  ;;  %v1188_v35 = vmax.f32 %v1098_v28, 0.0 }
 0x296   : > { %v1100_v31 = vpop.f32.mrf.mxu0  ;;  %1870 = vmatmul.mubr.bf16.gmra.mxu1 %v1213_v26 }
 0x297   : > { %v1101_v32 = vadd.f32 %v2366_v47, %v1100_v31  ;;  %v1191_v33 = vmax.f32 %v1109_v29, 0.0 }
 0x298   : > { %v1831_v34 = vpop.f32.mrf.mxu0 }
 0x299   : > { %v1189_v36 = vmax.f32 %v1101_v32, 0.0  ;;  %v1215_v40 = vpack.c.bf16 %v1191_v33, %v1190_v37  ;;  %v1122_v44 = vadd.f32 %v1831_v34, %v2366_v47  ;;  %v2406_v32 = vld [vmem:[%s2533_s8] ss:$0 sm:$0xff] }
 0x29a   : > { %v1113_v38 = vpop.f32.mrf.mxu0 }
 0x29b   : > { %v1214_v39 = vpack.c.bf16 %v1189_v36, %v1188_v35  ;;  %v1114_v42 = vadd.f32 %v2366_v47, %v1113_v38  ;;  %v1194_v51 = vmax.f32 %v1122_v44, 0.0 }
 0x29c   : > { %v1832_v41 = vpop.f32.mrf.mxu0 }
 0x29d   : > { %v1125_v43 = vadd.f32 %v1832_v41, %v2366_v47  ;;  %1873 = vmatprep.mubr.bf16.mxu1 %v1214_v39  ;;  %v1192_v49 = vmax.f32 %v1114_v42, 0.0 }
 0x29e   : > { %v1116_v59 = vpop.f32.mrf.mxu0  ;;  %1874 = vmatmul.mubr.bf16.gmra.mxu1 %v1215_v40 }
 0x29f   : > { %v1117_v45 = vadd.f32 %v2366_v47, %v1116_v59  ;;  %v1195_v46 = vmax.f32 %v1125_v43, 0.0 }
 0x2a0   : > { %v1835_v48 = vpop.f32.mrf.mxu0 }
 0x2a1   : > { %v1193_v50 = vmax.f32 %v1117_v45, 0.0  ;;  %v1217_v53 = vpack.c.bf16 %v1195_v46, %v1194_v51  ;;  %v1138_v58 = vadd.f32 %v1835_v48, %v2366_v47 }
 0x2a2   : > { %v1129_v52 = vpop.f32.mrf.mxu0 }
 0x2a3   : > { %v1216_v3 = vpack.c.bf16 %v1193_v50, %v1192_v49  ;;  %v1130_v55 = vadd.f32 %v2366_v47, %v1129_v52  ;;  %v1198_v56 = vmax.f32 %v1138_v58, 0.0 }
 0x2a4   : > { %v1836_v54 = vpop.f32.mrf.mxu0 }
 0x2a5   : > { %v1141_v57 = vadd.f32 %v1836_v54, %v2366_v47  ;;  %1877 = vmatprep.mubr.bf16.mxu1 %v1216_v3  ;;  %v1196_v0 = vmax.f32 %v1130_v55, 0.0 }
 0x2a6   : > { %v1132_v60 = vpop.f32.mrf.mxu0  ;;  %1878 = vmatmul.mubr.bf16.gmra.mxu1 %v1217_v53 }
 0x2a7   : > { %v1133_v61 = vadd.f32 %v2366_v47, %v1132_v60  ;;  %v1199_v62 = vmax.f32 %v1141_v57, 0.0 }
 0x2a8   : > { %v1839_v63 = vpop.f32.mrf.mxu0 }
 0x2a9   : > { %v1197_v1 = vmax.f32 %v1133_v61, 0.0  ;;  %v1219_v5 = vpack.c.bf16 %v1199_v62, %v1198_v56  ;;  %v1154_v9 = vadd.f32 %v1839_v63, %v2366_v47 }
 0x2aa   : > { %v1145_v2 = vpop.f32.mrf.mxu0 }
 0x2ab   : > { %v1218_v4 = vpack.c.bf16 %v1197_v1, %v1196_v0  ;;  %v1146_v7 = vadd.f32 %v2366_v47, %v1145_v2  ;;  %v1202_v16 = vmax.f32 %v1154_v9, 0.0 }
 0x2ac   : > { %v1840_v6 = vpop.f32.mrf.mxu0 }
 0x2ad   : > { %v1157_v8 = vadd.f32 %v1840_v6, %v2366_v47  ;;  %1881 = vmatprep.mubr.bf16.mxu1 %v1218_v4  ;;  %v1200_v14 = vmax.f32 %v1146_v7, 0.0 }
 0x2ae   : > { %v1148_v10 = vpop.f32.mrf.mxu0  ;;  %1882 = vmatmul.mubr.bf16.gmra.mxu1 %v1219_v5 }
 0x2af   : > { %v1149_v11 = vadd.f32 %v2366_v47, %v1148_v10  ;;  %v1203_v12 = vmax.f32 %v1157_v8, 0.0 }
 0x2b0   : > { %v1843_v13 = vpop.f32.mrf.mxu0 }
 0x2b1   : > { %v1201_v15 = vmax.f32 %v1149_v11, 0.0  ;;  %v1221_v19 = vpack.c.bf16 %v1203_v12, %v1202_v16  ;;  %v1170_v23 = vadd.f32 %v1843_v13, %v2366_v47 }
 0x2b2   : > { %v1161_v17 = vpop.f32.mrf.mxu0 }
 0x2b3   : > { %v1220_v18 = vpack.c.bf16 %v1201_v15, %v1200_v14  ;;  %v1162_v21 = vadd.f32 %v2366_v47, %v1161_v17  ;;  %v1206_v29 = vmax.f32 %v1170_v23, 0.0 }
 0x2b4   : > { %v1844_v20 = vpop.f32.mrf.mxu0 }
 0x2b5   : > { %v1173_v22 = vadd.f32 %v1844_v20, %v2366_v47  ;;  %1885 = vmatprep.mubr.bf16.mxu1 %v1220_v18  ;;  %v1204_v27 = vmax.f32 %v1162_v21, 0.0 }
 0x2b6   : > { %v1164_v24 = vpop.f32.mrf.mxu0  ;;  %1886 = vmatmul.mubr.bf16.gmra.mxu1 %v1221_v19 }
 0x2b7   : > { %v1165_v25 = vadd.f32 %v2366_v47, %v1164_v24  ;;  %v1207_v26 = vmax.f32 %v1173_v22, 0.0 }
 0x2b9   : > { %v1205_v28 = vmax.f32 %v1165_v25, 0.0  ;;  %v1223_v31 = vpack.c.bf16 %v1207_v26, %v1206_v29 }
 0x2bb   : > { %v1222_v30 = vpack.c.bf16 %v1205_v28, %v1204_v27 }
 0x2bd   : > { %1889 = vmatprep.mubr.bf16.mxu1 %v1222_v30 }
 0x2be   : > { %1890 = vmatmul.mubr.bf16.gmra.mxu1 %v1223_v31 }
 0x346   : > { %v1863_v33 = vpop.f32.mrf.mxu0 }
 0x347   : > { %v1338_v34 = vadd.f32 %v1863_v33, %v2406_v32 }
 0x348   : > { %v1329_v47 = vpop.f32.mrf.mxu0 }
 0x349   : > { %1458 = vst [vmem:[%s2409_s28 + $0x10] sm:$0xff] %v1338_v34  ;;  %v1330_v35 = vadd.f32 %v2406_v32, %v1329_v47 }
 0x34a   : > { %v1864_v36 = vpop.f32.mrf.mxu0 }
 0x34b   : > { %1456 = vst [vmem:[%s2409_s28] sm:$0xff] %v1330_v35  ;;  %v1341_v37 = vadd.f32 %v1864_v36, %v2406_v32 }
 0x34c   : > { %v1332_v38 = vpop.f32.mrf.mxu0 }
 0x34d   : > { %1459 = vst [vmem:[%s2409_s28 + $0x18] sm:$0xff] %v1341_v37  ;;  %v1333_v39 = vadd.f32 %v2406_v32, %v1332_v38 }
 0x34e   : > { %v1867_v40 = vpop.f32.mrf.mxu1 }
 0x34f   : > { %1457 = vst [vmem:[%s2409_s28 + $0x8] sm:$0xff] %v1333_v39  ;;  %v1354_v41 = vadd.f32 %v1867_v40, %v2406_v32 }
 0x350   : > { %v1345_v42 = vpop.f32.mrf.mxu1 }
 0x351   : > { %1462 = vst [vmem:[%s2409_s28 + $0x30] sm:$0xff] %v1354_v41  ;;  %v1346_v43 = vadd.f32 %v2406_v32, %v1345_v42 }
 0x352   : > { %v1868_v44 = vpop.f32.mrf.mxu1 }
 0x353   : > { %1460 = vst [vmem:[%s2409_s28 + $0x20] sm:$0xff] %v1346_v43  ;;  %v1357_v59 = vadd.f32 %v1868_v44, %v2406_v32 }
 0x354   : > { %v1348_v45 = vpop.f32.mrf.mxu1 }
 0x355   : > { %1463 = vst [vmem:[%s2409_s28 + $0x38] sm:$0xff] %v1357_v59  ;;  %v1349_v46 = vadd.f32 %v2406_v32, %v1348_v45 }
 0x356   : > { %v1871_v48 = vpop.f32.mrf.mxu1 }
 0x357   : > { %1461 = vst [vmem:[%s2409_s28 + $0x28] sm:$0xff] %v1349_v46  ;;  %v1370_v49 = vadd.f32 %v1871_v48, %v2406_v32 }
 0x358   : > { %v1361_v50 = vpop.f32.mrf.mxu1 }
 0x359   : > { %1466 = vst [vmem:[%s2409_s28 + $0x50] sm:$0xff] %v1370_v49  ;;  %v1362_v51 = vadd.f32 %v2406_v32, %v1361_v50 }
 0x35a   : > { %v1872_v52 = vpop.f32.mrf.mxu1 }
 0x35b   : > { %1464 = vst [vmem:[%s2409_s28 + $0x40] sm:$0xff] %v1362_v51  ;;  %v1373_v3 = vadd.f32 %v1872_v52, %v2406_v32 }
 0x35c   : > { %v1364_v53 = vpop.f32.mrf.mxu1 }
 0x35d   : > { %1467 = vst [vmem:[%s2409_s28 + $0x58] sm:$0xff] %v1373_v3  ;;  %v1365_v54 = vadd.f32 %v2406_v32, %v1364_v53 }
 0x35e   : > { %v1875_v55 = vpop.f32.mrf.mxu1 }
 0x35f   : > { %1465 = vst [vmem:[%s2409_s28 + $0x48] sm:$0xff] %v1365_v54  ;;  %v1386_v57 = vadd.f32 %v1875_v55, %v2406_v32 }
 0x360   : > { %v1377_v58 = vpop.f32.mrf.mxu1 }
 0x361   : > { %1470 = vst [vmem:[%s2409_s28 + $0x70] sm:$0xff] %v1386_v57  ;;  %v1378_v60 = vadd.f32 %v2406_v32, %v1377_v58 }
 0x362   : > { %v1876_v61 = vpop.f32.mrf.mxu1 }
 0x363   : > { %1468 = vst [vmem:[%s2409_s28 + $0x60] sm:$0xff] %v1378_v60  ;;  %v1389_v62 = vadd.f32 %v1876_v61, %v2406_v32 }
 0x364   : > { %v1380_v63 = vpop.f32.mrf.mxu1 }
 0x365   : > { %1471 = vst [vmem:[%s2409_s28 + $0x78] sm:$0xff] %v1389_v62  ;;  %v1381_v0 = vadd.f32 %v2406_v32, %v1380_v63 }
 0x366   : > { %v1879_v1 = vpop.f32.mrf.mxu1 }
 0x367   : > { %1469 = vst [vmem:[%s2409_s28 + $0x68] sm:$0xff] %v1381_v0  ;;  %v1402_v56 = vadd.f32 %v1879_v1, %v2406_v32 }
 0x368   : > { %v1393_v2 = vpop.f32.mrf.mxu1 }
 0x369   : > { %1474 = vst [vmem:[%s2409_s28 + $0x90] sm:$0xff] %v1402_v56  ;;  %v1394_v4 = vadd.f32 %v2406_v32, %v1393_v2 }
 0x36a   : > { %v1880_v5 = vpop.f32.mrf.mxu1 }
 0x36b   : > { %1472 = vst [vmem:[%s2409_s28 + $0x80] sm:$0xff] %v1394_v4  ;;  %v1405_v6 = vadd.f32 %v1880_v5, %v2406_v32 }
 0x36c   : > { %v1396_v7 = vpop.f32.mrf.mxu1 }
 0x36d   : > { %1475 = vst [vmem:[%s2409_s28 + $0x98] sm:$0xff] %v1405_v6  ;;  %v1397_v8 = vadd.f32 %v2406_v32, %v1396_v7 }
 0x36e   : > { %v1883_v9 = vpop.f32.mrf.mxu1 }
 0x36f   : > { %1473 = vst [vmem:[%s2409_s28 + $0x88] sm:$0xff] %v1397_v8  ;;  %v1418_v10 = vadd.f32 %v1883_v9, %v2406_v32 }
 0x370   : > { %v1409_v11 = vpop.f32.mrf.mxu1 }
 0x371   : > { %1478 = vst [vmem:[%s2409_s28 + $0xb0] sm:$0xff] %v1418_v10  ;;  %v1410_v12 = vadd.f32 %v2406_v32, %v1409_v11 }
 0x372   : > { %v1884_v13 = vpop.f32.mrf.mxu1 }
 0x373   : > { %1476 = vst [vmem:[%s2409_s28 + $0xa0] sm:$0xff] %v1410_v12  ;;  %v1421_v14 = vadd.f32 %v1884_v13, %v2406_v32 }
 0x374   : > { %v1412_v15 = vpop.f32.mrf.mxu1 }
 0x375   : > { %1479 = vst [vmem:[%s2409_s28 + $0xb8] sm:$0xff] %v1421_v14  ;;  %v1413_v16 = vadd.f32 %v2406_v32, %v1412_v15 }
 0x376   : > { %v1887_v17 = vpop.f32.mrf.mxu1 }
 0x377   : > { %1477 = vst [vmem:[%s2409_s28 + $0xa8] sm:$0xff] %v1413_v16  ;;  %v1434_v18 = vadd.f32 %v1887_v17, %v2406_v32 }
 0x378   : > { %v1425_v19 = vpop.f32.mrf.mxu1 }
 0x379   : > { %1482 = vst [vmem:[%s2409_s28 + $0xd0] sm:$0xff] %v1434_v18  ;;  %v1426_v20 = vadd.f32 %v2406_v32, %v1425_v19 }
 0x37a   : > { %v1888_v21 = vpop.f32.mrf.mxu1 }
 0x37b   : > { %1480 = vst [vmem:[%s2409_s28 + $0xc0] sm:$0xff] %v1426_v20  ;;  %v1437_v22 = vadd.f32 %v1888_v21, %v2406_v32 }
 0x37c   : > { %v1428_v23 = vpop.f32.mrf.mxu1 }
 0x37d   : > { %1483 = vst [vmem:[%s2409_s28 + $0xd8] sm:$0xff] %v1437_v22  ;;  %v1429_v24 = vadd.f32 %v2406_v32, %v1428_v23 }
 0x37e   : > { %v1891_v25 = vpop.f32.mrf.mxu1 }
 0x37f   : > { %1481 = vst [vmem:[%s2409_s28 + $0xc8] sm:$0xff] %v1429_v24  ;;  %v1450_v26 = vadd.f32 %v1891_v25, %v2406_v32 }
 0x380   : > { %v1441_v27 = vpop.f32.mrf.mxu1 }
 0x381   : > { %1486 = vst [vmem:[%s2409_s28 + $0xf0] sm:$0xff] %v1450_v26  ;;  %v1442_v28 = vadd.f32 %v2406_v32, %v1441_v27 }
 0x382   : > { %v1892_v29 = vpop.f32.mrf.mxu1 }
 0x383   : > { %1484 = vst [vmem:[%s2409_s28 + $0xe0] sm:$0xff] %v1442_v28  ;;  %v1453_v30 = vadd.f32 %v1892_v29, %v2406_v32 }
 0x384   : > { %v1444_v31 = vpop.f32.mrf.mxu1 }
 0x385   : > { %1487 = vst [vmem:[%s2409_s28 + $0xf8] sm:$0xff] %v1453_v30  ;;  %v1445_v33 = vadd.f32 %v2406_v32, %v1444_v31 }
 0x387   : > { %1485 = vst [vmem:[%s2409_s28 + $0xe8] sm:$0xff] %v1445_v33 }
 0x388   : > { %1989 = shalt.err (!%p1986_p3)
}
 0x389   : > { %s1990_s23 = scalar_lea.hbm %s2476_s22, 4096  ;;  %s1994_s29 = scalar_lea.hbm %s2534_s9, 8192 }
 0x38a   : > { %p1991_p4 = scmp.ne.s32.totalorder %s2476_s22, %s1990_s23  ;;  %p1995_p9 = scmp.lt.s32.totalorder %s2476_s22, %s2534_s9 }
 0x38b   : > { %p1996_p10 = scmp.lt.s32.totalorder %s1994_s29, %s1990_s23 }
 0x38c   : > { %p1992_p7 = pnand %p1991_p4, %p2129_p5 }
 0x38d   : > { %p1997_p11 = por %p1996_p10, %p1995_p9 }
 0x38e   : > { %p1993_p8 = pneg %p1992_p7 }
 0x390   : > { %p1998_p12 = pnand %p1997_p11, %p1993_p8 }
 0x392   : > { %2001 = shalt.err (!%p1998_p12)
}
 0x393   : > { %s2039_s21 = smov 128   ;;  %s2040_s24 = smov 8  }
 0x394   : > { %1909 = dma.vmem_to_hbm [thread:$0]  (%p2129_p5), %s2478_s14, 4096, %s2476_s22, %s2485_s13, %s2039_s21, %s2039_s21, %s2040_s24  }
 0x395 PF: > { %p1915_p13 = scmp.ge.s32.totalorder %s2036_s12, 2  ;;  %s1517_s25 = sand.u32 1, %s2024_s30  }
 0x396   : > { %s1518_s26 = scalar_lea.sflag [#allocation3], %s1517_s25 }
 0x397   : > { %p1912_p0 = pnand %p1915_p13, %p2133_p6 }
 0x399   : > { %p1913_p1 = pneg %p1912_p0 }
 0x39b   : > { %2019 = dma.done.wait (%p1913_p1), %s1518_s26, 4096  }
 0x39c   : > { %2021 = vsyncadd (%p1913_p1), %s1518_s26, 4294963200  ;;  %p19_p2 = scmp.ge.s32.totalorder %s2116_s15, 4   ;;  %s2537_s30 = smov %s2028_s10 }
 0x39d   : > { %s2538_s10 = smov %s2032_s11  ;;  %s2539_s11 = smov %s2127_s18 }
 0x39e   : > { %s2540_s12 = smov %s2116_s15  ;;  %21 = sbr.rel (!%p19_p2) target bundleno = 3 (0x3), region = 91 }
 0x3a3   :  { %1523 = vsyncpa [#allocation3], 1 }
 0x3a4   :  { %1525 = vsyncpa [#allocation3 + $0x1], 1 }

</bundles_post_ra>
